<compile_context>
chip_gen: v7x
topology: tpu7x:2x2x1
jax: 0.10.0
libtpu: 0.0.40
codegen_flags: <defaults>
</compile_context>

<pallas_src>
import jax
import jax.numpy as jnp
from jax.experimental import pallas as pl
from jax.experimental.pallas import tpu as pltpu


def _uw_loss_kernel(loss_ref, lv_ref, out_ref):
    # loss_ref, lv_ref: (1, T) in VMEM; out_ref: (1, 1) f32 in SMEM.
    losses = loss_ref[...].astype(jnp.float32)     # in-kernel dtype promotion
    log_vars = lv_ref[...].astype(jnp.float32)
    # loss / (2*exp(lv)) + lv  ==  loss * 0.5 * exp(-lv) + lv
    weighted = losses * (0.5 * jnp.exp(-log_vars)) + log_vars
    out_ref[0, 0] = jnp.sum(weighted)


def uncertainty_weighted_loss(losses, log_vars):
    """losses: (num_tasks,) per-task scalar losses.
       log_vars: (num_tasks,) parameter (zeros at init).
       Returns: scalar f32 combined loss."""
    num_tasks = losses.shape[0]
    # Reshape only (metadata / bitcast, no packed-array HBM round trip).
    losses_2d = losses.reshape(1, num_tasks)
    log_vars_2d = log_vars.reshape(1, num_tasks)

    out = pl.pallas_call(
        _uw_loss_kernel,
        out_shape=jax.ShapeDtypeStruct((1, 1), jnp.float32),
        in_specs=[
            pl.BlockSpec(memory_space=pltpu.MemorySpace.VMEM),
            pl.BlockSpec(memory_space=pltpu.MemorySpace.VMEM),
        ],
        out_specs=pl.BlockSpec(memory_space=pltpu.MemorySpace.SMEM),
        cost_estimate=pl.CostEstimate(
            flops=4 * num_tasks,
            transcendentals=num_tasks,
            bytes_accessed=8 * num_tasks + 4,
        ),
    )(losses_2d, log_vars_2d)
    # NOTE: under jit, consumers indexing the (1,1) result fuse this slice;
    # we return the scalar here to match the module's forward() semantics.
    return out[0, 0]


if __name__ == "__main__":
    num_tasks = 2

    # Parameter init, matching nn.Parameter(torch.zeros(num_tasks)).
    log_vars = jnp.zeros((num_tasks,), dtype=jnp.float32)

    # Deterministic example per-task losses (e.g. outputs of two task losses).
    key = jax.random.PRNGKey(0)
    k_loss, k_lv = jax.random.split(key)
    losses = jax.random.uniform(
        k_loss, (num_tasks,), dtype=jnp.float32, minval=0.1, maxval=2.0
    )

    # Case 1: zero-initialized log_vars (module init state).
    result = jax.block_until_ready(uncertainty_weighted_loss(losses, log_vars))
    ref = jnp.sum(losses / (2.0 * jnp.exp(log_vars)) + log_vars)
    assert jnp.allclose(result, ref, rtol=1e-6, atol=1e-6), (result, ref)

    # Case 2: non-zero log_vars to exercise the exp path.
    log_vars2 = jax.random.normal(k_lv, (num_tasks,), dtype=jnp.float32) * 0.5
    result2 = jax.block_until_ready(uncertainty_weighted_loss(losses, log_vars2))
    ref2 = jnp.sum(losses / (2.0 * jnp.exp(log_vars2)) + log_vars2)
    assert jnp.allclose(result2, ref2, rtol=1e-6, atol=1e-6), (result2, ref2)

    print("KERNEL_OK")
</pallas_src>

<mosaic_0001>
module attributes {stable_mosaic.version = 11 : i64} {
  func.func @_uw_loss_kernel(%arg0: memref<1x2xf32, #tpu.memory_space<vmem>>, %arg1: memref<1x2xf32, #tpu.memory_space<vmem>>, %arg2: memref<1x1xf32, #tpu.memory_space<smem>>) attributes {dimension_semantics = [], scalar_prefetch = 0 : i64, scratch_operands = 0 : i64, tpu.core_type = #tpu.core_type<tc>} {
    %c0 = arith.constant 0 : index
    %c0_0 = arith.constant 0 : index
    %0 = vector.load %arg0[%c0, %c0_0] : memref<1x2xf32, #tpu.memory_space<vmem>>, vector<1x2xf32>
    %c0_1 = arith.constant 0 : index
    %c0_2 = arith.constant 0 : index
    %1 = vector.load %arg1[%c0_1, %c0_2] : memref<1x2xf32, #tpu.memory_space<vmem>>, vector<1x2xf32>
    %cst = arith.constant 0.000000e+00 : f32
    %2 = vector.broadcast %cst : f32 to vector<1x2xf32>
    %3 = arith.subf %2, %1 : vector<1x2xf32>
    %4 = math.exp %3 : vector<1x2xf32>
    %cst_3 = arith.constant 5.000000e-01 : f32
    %5 = vector.broadcast %cst_3 : f32 to vector<1x2xf32>
    %6 = arith.mulf %5, %4 : vector<1x2xf32>
    %7 = arith.mulf %0, %6 : vector<1x2xf32>
    %8 = arith.addf %7, %1 : vector<1x2xf32>
    %9 = vector.shape_cast %8 : vector<1x2xf32> to vector<1x1x2xf32>
    %cst_4 = arith.constant dense<0.000000e+00> : vector<1xf32>
    %10 = vector.multi_reduction <add>, %9, %cst_4 [1, 2] : vector<1x1x2xf32> to vector<1xf32>
    %11 = vector.shape_cast %10 : vector<1xf32> to vector<1x1x1xf32>
    %12 = vector.extract %11[0, 0, 0] : f32 from vector<1x1x1xf32>
    %c0_5 = arith.constant 0 : index
    %c0_6 = arith.constant 0 : index
    %13 = memref.load %arg2[%c0_5, %c0_6] : memref<1x1xf32, #tpu.memory_space<smem>>
    memref.store %12, %arg2[%c0_5, %c0_6] : memref<1x1xf32, #tpu.memory_space<smem>>
    return
  }
}

</mosaic_0001>

<bundles_post_ra>
// kernel: tpu_custom_call.1
= control target key start
LH: loop header
LB: loop body
LE: loop exit
PB: predicated region body
PF: predicated region fallthrough
CT: control target
= control target key end

     0   :  { %7 = vsyncpa [#allocation3], 0  ;;  %s145_s0 = inlined_call_operand.hbm [shape: f32[1,2], index: 0, kind: input, shape index: {}]   ;;  %s146_s1 = inlined_call_operand.vmem [shape: f32[1,2], index: 1, kind: input, shape index: {}]   ;;  %s147_s2 = inlined_call_operand.hbm [shape: f32[1,1], index: 2, kind: output, shape index: {}]  }
   0x1   :  { %8 = vsyncpa [#allocation4], 0  ;;  %s101_s9 = smov [#allocation2]   ;;  %s65_s13 = scalar_lea.hbm %s145_s0, 16 }
   0x2   :  { %s15_s10 = sshll.u32 %s101_s9, 4  ;;  %p66_p0 = scmp.ne.s32.totalorder %s145_s0, %s65_s13  ;;  %s16_s10 = int_to_ptr.vmem [resolvable:$true] %s15_s10 }
   0x3   :  { %p69_p1 = scmp.lt.u32.totalorder %s65_s13, %s145_s0 }
   0x5   :  { %p71_p2 = pnand %p69_p1, %p66_p0 }
   0x7   :  { %74 = shalt.err (!%p71_p2)
}
   0x8   :  { %s75_s18 = scalar_lea.vmem %s16_s10, 16  ;;  %s79_s19 = scalar_lea.vmem %s16_s10, 32 }
   0x9   :  { %p76_p3 = scmp.ne.s32.totalorder %s16_s10, %s75_s18  ;;  %p80_p4 = scmp.lt.s32.totalorder %s16_s10, %s16_s10 }
   0xa   :  { %p81_p5 = scmp.lt.s32.totalorder %s79_s19, %s75_s18 }
   0xc   :  { %p82_p6 = por %p81_p5, %p80_p4 }
   0xe   :  { %p83_p7 = pnand %p82_p6, %p76_p3 }
  0x10   :  { %86 = shalt.err (!%p83_p7)
}
  0x11   :  { %18 = dma.hbm_to_vmem [thread:$0]  %s145_s0, 16, %s16_s10, [#allocation3]  }
  0x12   :  { %97 = dma.done.wait [#allocation3], 16  }
  0x13   :  { %98 = vsyncadd [#allocation3], 4294967280  ;;  %v25_v0 = vld [vmem:[%s146_s1] sm:$0x1]  ;;  %vm32_vm0 = vcmask 8192   ;;  %s87_s25 = scalar_lea.hbm %s147_s2, 16 }
  0x14   :  { %v26_v1 = vsub.f32 0.0, %v25_v0  ;;  %v24_v4 = vld [vmem:[#allocation2] sm:$0x1]  ;;  %p88_p8 = scmp.ne.s32.totalorder %s147_s2, %s87_s25  ;;  %p91_p9 = scmp.lt.u32.totalorder %s87_s25, %s147_s2 }
  0x16   :  { %v27_v2 = vmul.f32 1.442695, %v26_v1  ;;  %p93_p10 = pnand %p91_p9, %p88_p8 }
  0x18   :  { %63 = vpow2.f32 %v27_v2 }
  0x22   :  { %v64_v3 = vpop.eup %63 }
  0x23   :  { %v29_v5 = vmul.f32 0.5, %v64_v3 }
  0x25   :  { %v30_v6 = vmul.f32 %v29_v5, %v24_v4 }
  0x27   :  { %v31_v7 = vadd.f32 %v30_v6, %v25_v0 }
  0x29   :  { %v33_v8 = vsel %vm32_vm0, %v31_v7, 0.0 }
  0x2a   :  { %34 = vadd.xlane.f32.xlu0 %v33_v8 }
  0xb7   :  { %v35_v9 = vpop.xlane.xlu0 %34 }
  0xb8   :  { %v36_v10 = vrot.slane %v35_v9, 4 }
  0xba   :  { %v37_v11 = vadd.f32 %v36_v10, %v35_v9 }
  0xbc   :  { %v38_v12 = vrot.slane %v37_v11, 2 }
  0xbe   :  { %v39_v13 = vadd.f32 %v38_v12, %v37_v11 }
  0xc0   :  { %v40_v14 = vrot.slane %v39_v13, 1 }
  0xc2   :  { %v41_v15 = vadd.f32 %v40_v14, %v39_v13 }
  0xc4   :  { %59 = vpush %v41_v15 }
  0xf5   :  { %s60_s0 = spop %59 }
  0xf6   :  { %44 = sst [smem:[#allocation5]] %s60_s0 }
  0xf7   :  { %96 = shalt.err (!%p93_p10)
}
  0xf8   :  { %s102_s30 = smov [#allocation5]  }
  0xf9   :  { %52 = dma.smem_to_hbm %s102_s30, 16, %s147_s2, [#allocation4]  }
  0xfa   :  { %99 = dma.done.wait [#allocation4], 16  }
  0xfb   :  { %100 = vsyncadd [#allocation4], 4294967280 }
  0xfc   :  { %56 = sfence }
  0xfd   :  { %57 = vsyncpa [#allocation3], 1 }
  0xfe   :  { %58 = vsyncpa [#allocation4], 1 }

</bundles_post_ra>
